<compile_context>
chip_gen: v5e
topology: v5e:2x2
jax: 0.10.0
libtpu: 0.0.40
codegen_flags: <defaults>
</compile_context>

<pallas_src>
import functools

import jax
import jax.numpy as jnp
from jax.experimental import pallas as pl
from jax.experimental.pallas import tpu as pltpu

_LANE = 128


# -----------------------------------------------------------------------------
# Helpers
# -----------------------------------------------------------------------------
@functools.lru_cache(maxsize=None)
def _vmem_capacity_bytes():
    """Physical VMEM per TensorCore (v5e/v6e: 128 MiB, v7x: 64 MiB)."""
    try:
        return int(pltpu.get_tpu_info().vmem_capacity_bytes)
    except Exception:
        return 64 * 1024 * 1024  # conservative (v7x-sized) fallback


def _round_up(v, m):
    return ((v + m - 1) // m) * m


def _pick_tile(dim, cap, align=_LANE):
    """Largest multiple of `align` that divides `dim` and is <= cap.

    `dim` is always a multiple of `align` here (inputs are padded), so this
    always succeeds (worst case: `align` itself).
    """
    if dim <= cap:
        return dim
    t = (cap // align) * align
    while t >= align:
        if dim % t == 0:
            return t
        t -= align
    return dim  # unreachable after padding


# -----------------------------------------------------------------------------
# Fused path: all K steps in one kernel, adjacency resident (single-buffered).
# -----------------------------------------------------------------------------
def _sgconv_fused_kernel(x_ref, adj_hbm, o_ref, adj_vmem, sem, *, K):
    # Load the (padded) adjacency HBM -> VMEM exactly once; the scratch buffer
    # persists across all feature-panel grid steps and all K propagation steps
    # and is NOT double-buffered (unlike a resident BlockSpec input).
    @pl.when(pl.program_id(0) == 0)
    def _():
        cp = pltpu.make_async_copy(adj_hbm, adj_vmem, sem)
        cp.start()
        cp.wait()

    adj = adj_vmem[...]          # (Np, Np) bf16
    cur = x_ref[...]             # (Np, tn) bf16 feature panel
    for _ in range(K - 1):       # K is a small static int -> unrolled
        cur = jnp.dot(adj, cur, preferred_element_type=jnp.float32
                      ).astype(jnp.bfloat16)
    out = jnp.dot(adj, cur, preferred_element_type=jnp.float32)
    o_ref[...] = out.astype(o_ref.dtype)


def _sgconv_fused(adj_bf16, x_bf16, K, out_dtype, vmem_limit):
    Np = adj_bf16.shape[0]
    Fp = x_bf16.shape[1]
    tn = _pick_tile(Fp, 256)     # >=128 lanes (lane-dense stores), <=256 (MXU out)
    grid = (Fp // tn,)

    flops = 2 * K * Np * Np * Fp
    bytes_accessed = (adj_bf16.size * 2 + x_bf16.size * 2
                      + Np * Fp * jnp.dtype(out_dtype).itemsize)

    # TODO(synk): the feature axis is kept "arbitrary" because the adjacency
    # scratch is filled at program_id==0; a per-core load guard would be
    # needed to also shard feature panels across v7x's two TensorCores.
    return pl.pallas_call(
        functools.partial(_sgconv_fused_kernel, K=K),
        out_shape=jax.ShapeDtypeStruct((Np, Fp), out_dtype),
        grid_spec=pltpu.PrefetchScalarGridSpec(
            num_scalar_prefetch=0,
            grid=grid,
            in_specs=[
                pl.BlockSpec((Np, tn), lambda j: (0, j)),  # x feature panel (pipelined)
                pl.BlockSpec(memory_space=pl.ANY),         # adj stays in HBM; manual DMA
            ],
            out_specs=pl.BlockSpec((Np, tn), lambda j: (0, j)),
            scratch_shapes=[
                pltpu.VMEM((Np, Np), jnp.bfloat16),        # adj, single-buffered
                pltpu.SemaphoreType.DMA,
            ],
        ),
        compiler_params=pltpu.CompilerParams(
            dimension_semantics=("arbitrary",),
            vmem_limit_bytes=vmem_limit,
        ),
        cost_estimate=pl.CostEstimate(
            flops=int(flops), transcendentals=0, bytes_accessed=int(bytes_accessed)),
    )(x_bf16, adj_bf16)


# -----------------------------------------------------------------------------
# Tiled fallback: one tiled matmul per propagation step (large graphs).
# -----------------------------------------------------------------------------
def _matmul_kernel_single_k(a_ref, b_ref, o_ref):
    # Whole contraction in one k-tile: no accumulator scratch, no init/flush.
    o_ref[...] = jnp.dot(a_ref[...], b_ref[...],
                         preferred_element_type=jnp.float32).astype(o_ref.dtype)


def _matmul_kernel_acc(a_ref, b_ref, o_ref, acc_ref):
    @pl.when(pl.program_id(2) == 0)
    def _():
        acc_ref[...] = jnp.zeros_like(acc_ref)

    acc_ref[...] += jnp.dot(a_ref[...], b_ref[...],
                            preferred_element_type=jnp.float32)

    @pl.when(pl.program_id(2) == pl.num_programs(2) - 1)
    def _():
        o_ref[...] = acc_ref[...].astype(o_ref.dtype)


def _propagate_once_tiled(adj_bf16, x_bf16, out_dtype, vmem_limit, *,
                          tm_cap, tn_cap, tk_cap):
    Np = adj_bf16.shape[0]
    Fp = x_bf16.shape[1]

    # tn first: covering F with one tile means adj (the N^2 array and the HBM
    # bottleneck of this bandwidth-bound op) is streamed exactly once per step.
    tn = _pick_tile(Fp, tn_cap)
    tm = _pick_tile(Np, tm_cap)
    tk = _pick_tile(Np, tk_cap)
    grid = (Np // tm, Fp // tn, Np // tk)

    if grid[2] == 1:
        kernel = _matmul_kernel_single_k
        scratch = []
    else:
        kernel = _matmul_kernel_acc
        scratch = [pltpu.VMEM((tm, tn), jnp.float32)]

    flops = 2 * Np * Np * Fp
    bytes_accessed = (adj_bf16.size * 2 * max(1, Fp // tn)
                      + x_bf16.size * 2
                      + Np * Fp * jnp.dtype(out_dtype).itemsize)

    return pl.pallas_call(
        kernel,
        out_shape=jax.ShapeDtypeStruct((Np, Fp), out_dtype),
        grid_spec=pltpu.PrefetchScalarGridSpec(
            num_scalar_prefetch=0,
            grid=grid,
            in_specs=[
                pl.BlockSpec((tm, tk), lambda i, j, k: (i, k)),  # adj tile
                pl.BlockSpec((tk, tn), lambda i, j, k: (k, j)),  # x tile
            ],
            out_specs=pl.BlockSpec((tm, tn), lambda i, j, k: (i, j)),
            scratch_shapes=scratch,
        ),
        compiler_params=pltpu.CompilerParams(
            dimension_semantics=("parallel", "parallel", "arbitrary"),
            vmem_limit_bytes=vmem_limit,
        ),
        cost_estimate=pl.CostEstimate(
            flops=int(flops), transcendentals=0, bytes_accessed=int(bytes_accessed)),
    )(adj_bf16, x_bf16)


# -----------------------------------------------------------------------------
# SGConv forward
# -----------------------------------------------------------------------------
@functools.partial(jax.jit, static_argnames=("K", "force_tiled"))
def sgconv(x, adj, K=2, force_tiled=False):
    """SGConv.forward: K rounds of x <- adj @ x (no learnable parameters)."""
    if K <= 0:
        return x
    N, F = x.shape
    out_dtype = x.dtype

    # Zero-pad node / feature axes to lane multiples.  Exact for propagation:
    # zero rows/cols contribute nothing; result is recovered by slicing.
    Np = _round_up(N, _LANE)
    Fp = _round_up(F, _LANE)
    adj_p = jnp.pad(adj, ((0, Np - N), (0, Np - N))) if Np != N else adj
    x_p = jnp.pad(x, ((0, Np - N), (0, Fp - F))) if (Np != N or Fp != F) else x

    # bf16 MXU feed with f32 accumulation (halves adj + x HBM/VMEM traffic).
    adj_bf16 = adj_p.astype(jnp.bfloat16)
    x_bf16 = x_p.astype(jnp.bfloat16)

    # Per-generation VMEM sizing (v5e/v6e: 128 MiB physical, v7x: 64 MiB).
    vmem_cap = _vmem_capacity_bytes()
    vmem_limit = max(32 * 1024 * 1024,
                     min(int(0.85 * vmem_cap), 112 * 1024 * 1024))
    fused_budget = int(0.65 * vmem_cap)   # ~41 MiB on v7x, ~83 MiB on v5e/v6e

    # Fused-path VMEM estimate: adj resident once (manual single-buffered
    # scratch) + double-buffered x/out feature panels + f32 intermediates.
    tn_f = _pick_tile(Fp, 256)
    fused_bytes = (Np * Np * 2                 # adj scratch (1 buffer)
                   + 2 * Np * tn_f * 2         # x panel, double-buffered
                   + 2 * Np * tn_f * 4         # out panel, double-buffered
                   + 3 * Np * tn_f * 4)        # in-kernel matmul intermediates / slack

    if (not force_tiled) and fused_bytes <= fused_budget:
        out_p = _sgconv_fused(adj_bf16, x_bf16, K, out_dtype, vmem_limit)
    else:
        # Tiled path: bigger tiles on the big-VMEM generations.
        if vmem_cap >= 96 * 1024 * 1024:        # v5e / v6e
            caps = dict(tm_cap=1024, tn_cap=512, tk_cap=4096)
        else:                                   # v7x
            caps = dict(tm_cap=512, tn_cap=512, tk_cap=2048)
        # TODO(synk): the K steps could be fused into one tiled pallas_call
        # (ping-pong x panel in VMEM across steps) to drop the K-1 HBM
        # round-trips of the N x F intermediate; secondary to adj traffic.
        cur = x_bf16
        for step in range(K):
            dt = out_dtype if step == K - 1 else jnp.bfloat16
            cur = _propagate_once_tiled(adj_bf16, cur, dt, vmem_limit, **caps)
        out_p = cur

    if Np != N or Fp != F:
        out_p = out_p[:N, :F]
    return out_p


# -----------------------------------------------------------------------------
# Demo / self-test
# -----------------------------------------------------------------------------
if __name__ == "__main__":
    key = jax.random.PRNGKey(0)
    k_adj, k_x = jax.random.split(key)

    def ref_bf16(x, adj, K):
        # Same bf16 MXU feed / f32 accumulation as the kernels.
        adj_q = adj.astype(jnp.bfloat16).astype(jnp.float32)
        r = x
        for _ in range(K):
            r = jnp.dot(adj_q, r.astype(jnp.bfloat16).astype(jnp.float32),
                        preferred_element_type=jnp.float32)
        return r

    def ref_f32(x, adj, K):
        r = x
        for _ in range(K):
            r = adj @ r
        return r

    # --- tile-aligned graph: 256 nodes, 128 features, K=2 (fused path) ------
    N, F, K = 256, 128, 2
    adj = jax.random.uniform(k_adj, (N, N), dtype=jnp.float32)
    adj = adj / jnp.sum(adj, axis=1, keepdims=True)       # row-stochastic
    x = jax.random.normal(k_x, (N, F), dtype=jnp.float32)

    out = jax.block_until_ready(sgconv(x, adj, K=K))
    assert out.shape == (N, F)
    assert out.dtype == x.dtype
    assert jnp.allclose(out, ref_bf16(x, adj, K), atol=1e-4, rtol=1e-4), \
        "fused path mismatch vs bf16 reference"
    assert jnp.allclose(out, ref_f32(x, adj, K), atol=5e-3, rtol=5e-3), \
        "fused path mismatch vs f32 reference"

    # --- same graph through the tiled fallback path (forced) ----------------
    out_t = jax.block_until_ready(sgconv(x, adj, K=K, force_tiled=True))
    assert jnp.allclose(out_t, ref_bf16(x, adj, K), atol=1e-4, rtol=1e-4), \
        "tiled path mismatch vs bf16 reference"

    # --- non-128-aligned graph exercises the zero-padding path --------------
    N2, F2 = 200, 96
    adj2 = jax.random.uniform(k_adj, (N2, N2), dtype=jnp.float32)
    adj2 = adj2 / jnp.sum(adj2, axis=1, keepdims=True)
    x2 = jax.random.normal(k_x, (N2, F2), dtype=jnp.float32)
    out2 = jax.block_until_ready(sgconv(x2, adj2, K=K))
    assert out2.shape == (N2, F2)
    assert jnp.allclose(out2, ref_bf16(x2, adj2, K), atol=1e-4, rtol=1e-4), \
        "padded path mismatch vs bf16 reference"

    print("KERNEL_OK")
</pallas_src>

<mosaic_0001>
module attributes {stable_mosaic.version = 11 : i64} {
  func.func @_sgconv_fused_kernel(%arg0: i32, %arg1: memref<256x128xbf16, #tpu.memory_space<vmem>>, %arg2: memref<256x256xbf16, #tpu.memory_space<any>>, %arg3: memref<256x128xf32, #tpu.memory_space<vmem>>, %arg4: memref<256x256xbf16, #tpu.memory_space<vmem>>, %arg5: memref<!tpu.dma_semaphore, #tpu.memory_space<semaphore_mem>>) attributes {dimension_semantics = [#tpu.dimension_semantics<arbitrary>], iteration_bounds = array<i64: 1>, scalar_prefetch = 0 : i64, scratch_operands = 2 : i64, tpu.core_type = #tpu.core_type<tc>, window_params = [{transform_indices = @transform_0, window_bounds = array<i64: 256, 128>}, {}, {transform_indices = @transform_2, window_bounds = array<i64: 256, 128>}]} {
    %c0_i32 = arith.constant 0 : i32
    %0 = arith.cmpi eq, %arg0, %c0_i32 : i32
    %1 = arith.extui %0 : i1 to i32
    %c0_i32_0 = arith.constant 0 : i32
    %2 = arith.cmpi ne, %1, %c0_i32_0 : i32
    scf.if %2 {
      tpu.enqueue_dma source(%arg2 : memref<256x256xbf16, #tpu.memory_space<any>>) target(%arg4 : memref<256x256xbf16, #tpu.memory_space<vmem>>) target_semaphore(%arg5 : memref<!tpu.dma_semaphore, #tpu.memory_space<semaphore_mem>>)
      tpu.wait_dma2 semaphore(%arg5 : memref<!tpu.dma_semaphore, #tpu.memory_space<semaphore_mem>>) src(%arg2 : memref<256x256xbf16, #tpu.memory_space<any>>) dst(%arg4 : memref<256x256xbf16, #tpu.memory_space<vmem>>)
    } else {
    }
    %c0 = arith.constant 0 : index
    %c0_1 = arith.constant 0 : index
    %3 = vector.load %arg4[%c0, %c0_1] : memref<256x256xbf16, #tpu.memory_space<vmem>>, vector<256x256xbf16>
    %c0_2 = arith.constant 0 : index
    %c0_3 = arith.constant 0 : index
    %4 = vector.load %arg1[%c0_2, %c0_3] : memref<256x128xbf16, #tpu.memory_space<vmem>>, vector<256x128xbf16>
    %cst = arith.constant dense<0.000000e+00> : vector<256x128xf32>
    %5 = tpu.matmul %3, %4, %cst {dimension_numbers = #tpu.dot_dimension_numbers<[1], [0], [0], [1], [0, 0, 1, 1], [], []>} : vector<256x256xbf16>, vector<256x128xbf16>, vector<256x128xf32> -> vector<256x128xf32>
    %6 = arith.truncf %5 : vector<256x128xf32> to vector<256x128xbf16>
    %cst_4 = arith.constant dense<0.000000e+00> : vector<256x128xf32>
    %7 = tpu.matmul %3, %6, %cst_4 {dimension_numbers = #tpu.dot_dimension_numbers<[1], [0], [0], [1], [0, 0, 1, 1], [], []>} : vector<256x256xbf16>, vector<256x128xbf16>, vector<256x128xf32> -> vector<256x128xf32>
    %c0_5 = arith.constant 0 : index
    %c0_6 = arith.constant 0 : index
    %8 = vector.load %arg3[%c0_5, %c0_6] : memref<256x128xf32, #tpu.memory_space<vmem>>, vector<256x128xf32>
    tpu.vector_store %arg3[%c0_5, %c0_6], %7 {strides = array<i32>} : memref<256x128xf32, #tpu.memory_space<vmem>>, vector<256x128xf32>,
    return
  }
  func.func @transform_0(%arg0: i32) -> (i32, i32) {
    %c0_i32 = arith.constant 0 : i32
    %c0_i32_0 = arith.constant 0 : i32
    return %c0_i32, %arg0 : i32, i32
  }
  func.func @transform_2(%arg0: i32) -> (i32, i32) {
    %c0_i32 = arith.constant 0 : i32
    %c0_i32_0 = arith.constant 0 : i32
    return %c0_i32, %arg0 : i32, i32
  }
}

</mosaic_0001>

<bundles_post_ra>
// kernel: sgconv.1
= control target key start
LH: loop header
LB: loop body
LE: loop exit
PB: predicated region body
PF: predicated region fallthrough
CT: control target
= control target key end

     0   :  { %7 = vsyncpa [#allocation5], 0  ;;  %s1463_s0 = inlined_call_operand.vmem [shape: bf16[256,128], index: 0, kind: input, shape index: {}]   ;;  %s1464_s1 = inlined_call_operand.vmem [shape: bf16[256,256], index: 1, kind: input, shape index: {}]   ;;  %s1465_s2 = inlined_call_operand.hbm [shape: f32[256,128], index: 2, kind: output, shape index: {}]  }
   0x1   :  { %v24_v0 = vld [vmem:[%s1464_s1] sm:$0xff]  ;;  %v26_v1 = vld [vmem:[%s1464_s1 + $0x8] sm:$0xff]  ;;  %v28_v2 = vld [vmem:[%s1464_s1 + $0x10] sm:$0xff] }
   0x2   :  { %25 = vst [vmem:[#allocation2] sm:$0xff] %v24_v0  ;;  %v30_v3 = vld [vmem:[%s1464_s1 + $0x18] sm:$0xff]  ;;  %v32_v4 = vld [vmem:[%s1464_s1 + $0x20] sm:$0xff]  ;;  %v34_v5 = vld [vmem:[%s1464_s1 + $0x28] sm:$0xff] }
   0x3   :  { %27 = vst [vmem:[#allocation2 + $0x8] sm:$0xff] %v26_v1  ;;  %v36_v6 = vld [vmem:[%s1464_s1 + $0x30] sm:$0xff]  ;;  %v38_v7 = vld [vmem:[%s1464_s1 + $0x38] sm:$0xff]  ;;  %v40_v8 = vld [vmem:[%s1464_s1 + $0x40] sm:$0xff] }
   0x4   :  { %29 = vst [vmem:[#allocation2 + $0x10] sm:$0xff] %v28_v2  ;;  %v42_v9 = vld [vmem:[%s1464_s1 + $0x48] sm:$0xff]  ;;  %v44_v10 = vld [vmem:[%s1464_s1 + $0x50] sm:$0xff]  ;;  %v46_v11 = vld [vmem:[%s1464_s1 + $0x58] sm:$0xff] }
   0x5   :  { %31 = vst [vmem:[#allocation2 + $0x18] sm:$0xff] %v30_v3  ;;  %v48_v12 = vld [vmem:[%s1464_s1 + $0x60] sm:$0xff]  ;;  %v50_v13 = vld [vmem:[%s1464_s1 + $0x68] sm:$0xff]  ;;  %v52_v14 = vld [vmem:[%s1464_s1 + $0x70] sm:$0xff] }
   0x6   :  { %33 = vst [vmem:[#allocation2 + $0x20] sm:$0xff] %v32_v4  ;;  %v54_v15 = vld [vmem:[%s1464_s1 + $0x78] sm:$0xff]  ;;  %v56_v16 = vld [vmem:[%s1464_s1 + $0x80] sm:$0xff]  ;;  %v58_v17 = vld [vmem:[%s1464_s1 + $0x88] sm:$0xff] }
   0x7   :  { %35 = vst [vmem:[#allocation2 + $0x28] sm:$0xff] %v34_v5  ;;  %v60_v18 = vld [vmem:[%s1464_s1 + $0x90] sm:$0xff]  ;;  %v62_v19 = vld [vmem:[%s1464_s1 + $0x98] sm:$0xff]  ;;  %v64_v20 = vld [vmem:[%s1464_s1 + $0xa0] sm:$0xff] }
   0x8   :  { %37 = vst [vmem:[#allocation2 + $0x30] sm:$0xff] %v36_v6  ;;  %v66_v21 = vld [vmem:[%s1464_s1 + $0xa8] sm:$0xff]  ;;  %v68_v22 = vld [vmem:[%s1464_s1 + $0xb0] sm:$0xff]  ;;  %v70_v23 = vld [vmem:[%s1464_s1 + $0xb8] sm:$0xff] }
   0x9   :  { %39 = vst [vmem:[#allocation2 + $0x38] sm:$0xff] %v38_v7  ;;  %v72_v24 = vld [vmem:[%s1464_s1 + $0xc0] sm:$0xff]  ;;  %v74_v25 = vld [vmem:[%s1464_s1 + $0xc8] sm:$0xff]  ;;  %v76_v26 = vld [vmem:[%s1464_s1 + $0xd0] sm:$0xff] }
   0xa   :  { %41 = vst [vmem:[#allocation2 + $0x40] sm:$0xff] %v40_v8  ;;  %v78_v27 = vld [vmem:[%s1464_s1 + $0xd8] sm:$0xff]  ;;  %v80_v28 = vld [vmem:[%s1464_s1 + $0xe0] sm:$0xff]  ;;  %v82_v29 = vld [vmem:[%s1464_s1 + $0xe8] sm:$0xff] }
   0xb   :  { %43 = vst [vmem:[#allocation2 + $0x48] sm:$0xff] %v42_v9  ;;  %v84_v30 = vld [vmem:[%s1464_s1 + $0xf0] sm:$0xff]  ;;  %v86_v31 = vld [vmem:[%s1464_s1 + $0xf8] sm:$0xff] }
   0xc   :  { %45 = vst [vmem:[#allocation2 + $0x50] sm:$0xff] %v44_v10 }
   0xd   :  { %47 = vst [vmem:[#allocation2 + $0x58] sm:$0xff] %v46_v11 }
   0xe   :  { %49 = vst [vmem:[#allocation2 + $0x60] sm:$0xff] %v48_v12 }
   0xf   :  { %51 = vst [vmem:[#allocation2 + $0x68] sm:$0xff] %v50_v13 }
  0x10   :  { %53 = vst [vmem:[#allocation2 + $0x70] sm:$0xff] %v52_v14 }
  0x11   :  { %55 = vst [vmem:[#allocation2 + $0x78] sm:$0xff] %v54_v15 }
  0x12   :  { %57 = vst [vmem:[#allocation2 + $0x80] sm:$0xff] %v56_v16 }
  0x13   :  { %59 = vst [vmem:[#allocation2 + $0x88] sm:$0xff] %v58_v17 }
  0x14   :  { %61 = vst [vmem:[#allocation2 + $0x90] sm:$0xff] %v60_v18 }
  0x15   :  { %63 = vst [vmem:[#allocation2 + $0x98] sm:$0xff] %v62_v19 }
  0x16   :  { %65 = vst [vmem:[#allocation2 + $0xa0] sm:$0xff] %v64_v20 }
  0x17   :  { %67 = vst [vmem:[#allocation2 + $0xa8] sm:$0xff] %v66_v21 }
  0x18   :  { %69 = vst [vmem:[#allocation2 + $0xb0] sm:$0xff] %v68_v22 }
  0x19   :  { %71 = vst [vmem:[#allocation2 + $0xb8] sm:$0xff] %v70_v23 }
  0x1a   :  { %73 = vst [vmem:[#allocation2 + $0xc0] sm:$0xff] %v72_v24 }
  0x1b   :  { %75 = vst [vmem:[#allocation2 + $0xc8] sm:$0xff] %v74_v25 }
  0x1c   :  { %77 = vst [vmem:[#allocation2 + $0xd0] sm:$0xff] %v76_v26 }
  0x1d   :  { %79 = vst [vmem:[#allocation2 + $0xd8] sm:$0xff] %v78_v27 }
  0x1e   :  { %81 = vst [vmem:[#allocation2 + $0xe0] sm:$0xff] %v80_v28 }
  0x1f   :  { %83 = vst [vmem:[#allocation2 + $0xe8] sm:$0xff] %v82_v29 }
  0x20   :  { %85 = vst [vmem:[#allocation2 + $0xf0] sm:$0xff] %v84_v30 }
  0x21   :  { %87 = vst [vmem:[#allocation2 + $0xf8] sm:$0xff] %v86_v31 }
  0x22   :  { %93 = vsyncadd [#allocation3], 4096 }
  0x23   :  { %1118 = dma.done.wait [#allocation3], 4096 }
  0x24   :  { %1119 = vsyncadd [#allocation3], 4294963200  ;;  %v1082_v32 = vld [vmem:[%s1463_s0 + $0x38] sm:$0xff]  ;;  %v1081_v34 = vld [vmem:[%s1463_s0 + $0x30] sm:$0xff]  ;;  %s828_s1 = sshll.u32 %s1465_s2, 4  ;;  %s1123_s23 = smov 128   ;;  %s829_s1 = int_to_ptr.hbm [resolvable:$true] %s828_s1 }
  0x25   :  { %v1090_v33 = vld [vmem:[%s1463_s0 + $0x78] sm:$0xff]  ;;  %418 = vmatpush.bf16.msra.mxu0 %v1082_v32  ;;  %v1089_v35 = vld [vmem:[%s1463_s0 + $0x70] sm:$0xff]  ;;  %v1080_v36 = vld [vmem:[%s1463_s0 + $0x28] sm:$0xff]  ;;  %s1124_s24 = smov 8  }
  0x26   :  { %507 = vmatpush.bf16.msra.mxu1 %v1090_v33  ;;  %v1088_v37 = vld [vmem:[%s1463_s0 + $0x68] sm:$0xff]  ;;  %v1079_v38 = vld [vmem:[%s1463_s0 + $0x20] sm:$0xff]  ;;  %v1078_v40 = vld [vmem:[%s1463_s0 + $0x18] sm:$0xff] }
  0x27   :  { %v1087_v39 = vld [vmem:[%s1463_s0 + $0x60] sm:$0xff]  ;;  %v1086_v41 = vld [vmem:[%s1463_s0 + $0x58] sm:$0xff]  ;;  %v1077_v42 = vld [vmem:[%s1463_s0 + $0x10] sm:$0xff] }
  0x28   :  { %v1085_v43 = vld [vmem:[%s1463_s0 + $0x50] sm:$0xff]  ;;  %v1076_v44 = vld [vmem:[%s1463_s0 + $0x8] sm:$0xff]  ;;  %v1075_v46 = vld [vmem:[%s1463_s0] sm:$0xff] }
  0x29   :  { %419 = vmatpush.bf16.msra.mxu0 %v1081_v34  ;;  %v1084_v45 = vld [vmem:[%s1463_s0 + $0x48] sm:$0xff]  ;;  %v1083_v47 = vld [vmem:[%s1463_s0 + $0x40] sm:$0xff]  ;;  %v860_v54 = vld [vmem:[#allocation2 + $0x10] sm:$0xf]  ;;  %s1122_s0 = smov [#allocation4]  }
  0x2a   :  { %508 = vmatpush.bf16.msra.mxu1 %v1089_v35  ;;  %v852_v48 = vld [vmem:[#allocation2] sm:$0xf]  ;;  %v1044_v49 = vld [vmem:[#allocation2 + $0x4] sm:$0xf0]  ;;  %v1043_v50 = vld [vmem:[#allocation2 + $0x4] sm:$0xf] }
  0x2b   :  { %v854_v51 = vld [vmem:[#allocation2 + $0x8] sm:$0xf0]  ;;  %v1284_v52 = vor.u32 %v1044_v49, %v852_v48  ;;  %v1046_v55 = vld [vmem:[#allocation2 + $0x14] sm:$0xf0]  ;;  %v1045_v56 = vld [vmem:[#allocation2 + $0x14] sm:$0xf] }
  0x2c   :  { %v1286_v53 = vor.u32 %v1043_v50, %v854_v51  ;;  %v862_v57 = vld [vmem:[#allocation2 + $0x18] sm:$0xf0]  ;;  %v1290_v58 = vor.u32 %v1046_v55, %v860_v54  ;;  %v868_v60 = vld [vmem:[#allocation2 + $0x20] sm:$0xf]  ;;  %v1048_v61 = vld [vmem:[#allocation2 + $0x24] sm:$0xf0] }
  0x2d   :  { %420 = vmatpush.bf16.msra.mxu0 %v1080_v36  ;;  %v1292_v59 = vor.u32 %v1045_v56, %v862_v57  ;;  %v1047_v62 = vld [vmem:[#allocation2 + $0x24] sm:$0xf]  ;;  %v870_v63 = vld [vmem:[#allocation2 + $0x28] sm:$0xf0]  ;;  %v1296_v0 = vor.u32 %v1048_v61, %v868_v60  ;;  %v876_v2 = vld [vmem:[#allocation2 + $0x30] sm:$0xf] }
  0x2e   :  { %509 = vmatpush.bf16.msra.mxu1 %v1088_v37  ;;  %v1298_v1 = vor.u32 %v1047_v62, %v870_v63  ;;  %v1050_v3 = vld [vmem:[#allocation2 + $0x34] sm:$0xf0]  ;;  %v1049_v4 = vld [vmem:[#allocation2 + $0x34] sm:$0xf]  ;;  %v878_v5 = vld [vmem:[#allocation2 + $0x38] sm:$0xf0] }
  0x2f   :  { %v1302_v6 = vor.u32 %v1050_v3, %v876_v2  ;;  %v1304_v7 = vor.u32 %v1049_v4, %v878_v5  ;;  %v884_v8 = vld [vmem:[#allocation2 + $0x40] sm:$0xf]  ;;  %v1052_v9 = vld [vmem:[#allocation2 + $0x44] sm:$0xf0]  ;;  %v1051_v10 = vld [vmem:[#allocation2 + $0x44] sm:$0xf] }
  0x30   :  { %v886_v11 = vld [vmem:[#allocation2 + $0x48] sm:$0xf0]  ;;  %v1308_v12 = vor.u32 %v1052_v9, %v884_v8  ;;  %v892_v14 = vld [vmem:[#allocation2 + $0x50] sm:$0xf]  ;;  %v1054_v15 = vld [vmem:[#allocation2 + $0x54] sm:$0xf0] }
  0x31   :  { %421 = vmatpush.bf16.msra.mxu0 %v1079_v38  ;;  %v1310_v13 = vor.u32 %v1051_v10, %v886_v11  ;;  %v1053_v16 = vld [vmem:[#allocation2 + $0x54] sm:$0xf]  ;;  %v894_v17 = vld [vmem:[#allocation2 + $0x58] sm:$0xf0]  ;;  %v1314_v18 = vor.u32 %v1054_v15, %v892_v14  ;;  %v900_v20 = vld [vmem:[#allocation2 + $0x60] sm:$0xf] }
  0x32   :  { %510 = vmatpush.bf16.msra.mxu1 %v1087_v39  ;;  %v1316_v19 = vor.u32 %v1053_v16, %v894_v17  ;;  %v1056_v21 = vld [vmem:[#allocation2 + $0x64] sm:$0xf0]  ;;  %v1055_v22 = vld [vmem:[#allocation2 + $0x64] sm:$0xf]  ;;  %v902_v23 = vld [vmem:[#allocation2 + $0x68] sm:$0xf0] }
  0x33   :  { %v1320_v24 = vor.u32 %v1056_v21, %v900_v20  ;;  %v1322_v25 = vor.u32 %v1055_v22, %v902_v23  ;;  %v908_v26 = vld [vmem:[#allocation2 + $0x70] sm:$0xf]  ;;  %v1058_v27 = vld [vmem:[#allocation2 + $0x74] sm:$0xf0]  ;;  %v1057_v28 = vld [vmem:[#allocation2 + $0x74] sm:$0xf] }
  0x34   :  { %v910_v29 = vld [vmem:[#allocation2 + $0x78] sm:$0xf0]  ;;  %v1326_v30 = vor.u32 %v1058_v27, %v908_v26  ;;  %v916_v32 = vld [vmem:[#allocation2 + $0x80] sm:$0xf]  ;;  %v1060_v33 = vld [vmem:[#allocation2 + $0x84] sm:$0xf0] }
  0x35   :  { %422 = vmatpush.bf16.msra.mxu0 %v1078_v40  ;;  %v1328_v31 = vor.u32 %v1057_v28, %v910_v29  ;;  %v1059_v34 = vld [vmem:[#allocation2 + $0x84] sm:$0xf]  ;;  %v918_v35 = vld [vmem:[#allocation2 + $0x88] sm:$0xf0]  ;;  %v1332_v36 = vor.u32 %v1060_v33, %v916_v32  ;;  %v926_v48 = vld [vmem:[#allocation2 + $0x98] sm:$0xf0] }
  0x36   :  { %511 = vmatpush.bf16.msra.mxu1 %v1086_v41  ;;  %v1334_v37 = vor.u32 %v1059_v34, %v918_v35  ;;  %v932_v61 = vld [vmem:[#allocation2 + $0xa0] sm:$0xf]  ;;  %v1064_v63 = vld [vmem:[#allocation2 + $0xa4] sm:$0xf0]  ;;  %v1063_v2 = vld [vmem:[#allocation2 + $0xa4] sm:$0xf] }
  0x37   :  { %v934_v3 = vld [vmem:[#allocation2 + $0xa8] sm:$0xf0]  ;;  %v1356_v4 = vor.u32 %v1064_v63, %v932_v61  ;;  %v940_v16 = vld [vmem:[#allocation2 + $0xb0] sm:$0xf]  ;;  %v1066_v20 = vld [vmem:[#allocation2 + $0xb4] sm:$0xf0] }
  0x38   :  { %v1358_v5 = vor.u32 %v1063_v2, %v934_v3  ;;  %v1065_v21 = vld [vmem:[#allocation2 + $0xb4] sm:$0xf]  ;;  %v942_v22 = vld [vmem:[#allocation2 + $0xb8] sm:$0xf0]  ;;  %v1368_v23 = vor.u32 %v1066_v20, %v940_v16  ;;  %v948_v35 = vld [vmem:[#allocation2 + $0xc0] sm:$0xf] }
  0x39   :  { %423 = vmatpush.bf16.msra.mxu0 %v1077_v42  ;;  %v1370_v26 = vor.u32 %v1065_v21, %v942_v22  ;;  %v1070_v61 = vld [vmem:[#allocation2 + $0xd4] sm:$0xf0]  ;;  %v1069_v63 = vld [vmem:[#allocation2 + $0xd4] sm:$0xf]  ;;  %v958_v2 = vld [vmem:[#allocation2 + $0xd8] sm:$0xf0] }
  0x3a   :  { %512 = vmatpush.bf16.msra.mxu1 %v1085_v43  ;;  %1473 = vst [vmem:[#allocation9_spill] sm:$0xff] %v1358_v5  ;;  %v964_v20 = vld [vmem:[#allocation2 + $0xe0] sm:$0xf]  ;;  %v1072_v21 = vld [vmem:[#allocation2 + $0xe4] sm:$0xf0]  ;;  %s826_s20 = sshll.u32 %s1122_s0, 4  ;;  %s827_s20 = int_to_ptr.vmem [resolvable:$true] %s826_s20 }
  0x3b   :  { %1474 = vst [vmem:[#allocation10_spill] sm:$0xff] %v1370_v26  ;;  %v1071_v22 = vld [vmem:[#allocation2 + $0xe4] sm:$0xf] }
  0x3d   :  { %424 = vmatpush.bf16.msra.mxu0 %v1076_v44  ;;  %v924_v44 = vld [vmem:[#allocation2 + $0x90] sm:$0xf] }
  0x3e   :  { %513 = vmatpush.bf16.msra.mxu1 %v1084_v45 }
  0x41   :  { %425 = vmatpush.bf16.msra.mxu0 %v1075_v46  ;;  %v1062_v46 = vld [vmem:[#allocation2 + $0x94] sm:$0xf0] }
  0x42   :  { %514 = vmatpush.bf16.msra.mxu1 %v1083_v47  ;;  %v1061_v47 = vld [vmem:[#allocation2 + $0x94] sm:$0xf]  ;;  %v1344_v49 = vor.u32 %v1062_v46, %v924_v44 }
  0x43   :  { %v1346_v50 = vor.u32 %v1061_v47, %v926_v48 }
  0x44   :  { %426 = vmatmul.bf16.vlgmr.msra.gmra.mxu0 %v1284_v52 }
  0x45   :  { %515 = vmatmul.bf16.vlgmr.msra.gmra.mxu1 %v1286_v53 }
  0x54   :  { %431 = vmatmul.bf16.gmra.mxu0 %v1290_v58 }
  0x55   :  { %520 = vmatmul.bf16.gmra.mxu1 %v1292_v59 }
  0x64   :  { %436 = vmatmul.bf16.gmra.mxu0 %v1296_v0 }
  0x65   :  { %525 = vmatmul.bf16.gmra.mxu1 %v1298_v1 }
  0x74   :  { %441 = vmatmul.bf16.gmra.mxu0 %v1302_v6 }
  0x75   :  { %530 = vmatmul.bf16.gmra.mxu1 %v1304_v7 }
  0x84   :  { %446 = vmatmul.bf16.gmra.mxu0 %v1308_v12 }
  0x85   :  { %535 = vmatmul.bf16.gmra.mxu1 %v1310_v13 }
  0x94   :  { %451 = vmatmul.bf16.gmra.mxu0 %v1314_v18 }
  0x95   :  { %540 = vmatmul.bf16.gmra.mxu1 %v1316_v19 }
  0xa4   :  { %456 = vmatmul.bf16.gmra.mxu0 %v1320_v24 }
  0xa5   :  { %545 = vmatmul.bf16.gmra.mxu1 %v1322_v25 }
  0xb4   :  { %461 = vmatmul.bf16.gmra.mxu0 %v1326_v30 }
  0xb5   :  { %550 = vmatmul.bf16.gmra.mxu1 %v1328_v31 }
  0xc1   :  { %v427_v38 = vpop.f32.mrf.mxu0 }
  0xc2   :  { %v516_v39 = vpop.f32.mrf.mxu1 }
  0xc3   :  { %v1336_v40 = vadd.f32 %v516_v39, %v427_v38  ;;  %v1068_v39 = vld [vmem:[#allocation2 + $0xc4] sm:$0xf0] }
  0xc4   :  { %466 = vmatmul.bf16.gmra.mxu0 %v1332_v36  ;;  %v1380_v44 = vor.u32 %v1068_v39, %v948_v35 }
  0xc5   :  { %555 = vmatmul.bf16.gmra.mxu1 %v1334_v37 }
  0xc9   :  { %v429_v41 = vpop.f32.mrf.mxu0 }
  0xca   :  { %v518_v42 = vpop.f32.mrf.mxu1 }
  0xcb   :  { %v1340_v43 = vadd.f32 %v518_v42, %v429_v41  ;;  %v1067_v41 = vld [vmem:[#allocation2 + $0xc4] sm:$0xf]  ;;  %v950_v42 = vld [vmem:[#allocation2 + $0xc8] sm:$0xf0] }
  0xcc   :  { %v1382_v46 = vor.u32 %v1067_v41, %v950_v42  ;;  %v972_v42 = vld [vmem:[#allocation2 + $0xf0] sm:$0xf] }
  0xce   :  { %1475 = vst [vmem:[#allocation11_spill] sm:$0xff] %v1382_v46 }
  0xd1   :  { %v432_v51 = vpop.f32.mrf.mxu0 }
  0xd2   :  { %v521_v54 = vpop.f32.mrf.mxu1 }
  0xd3   :  { %v1348_v55 = vadd.f32 %v521_v54, %v432_v51 }
  0xd4   :  { %471 = vmatmul.bf16.gmra.mxu0 %v1344_v49 }
  0xd5   :  { %560 = vmatmul.bf16.gmra.mxu1 %v1346_v50 }
  0xd9   :  { %v434_v56 = vpop.f32.mrf.mxu0 }
  0xda   :  { %v523_v57 = vpop.f32.mrf.mxu1 }
  0xdb   :  { %v1352_v60 = vadd.f32 %v523_v57, %v434_v56  ;;  %v956_v57 = vld [vmem:[#allocation2 + $0xd0] sm:$0xf] }
  0xdc   :  { %v1386_v3 = vor.u32 %v1070_v61, %v956_v57  ;;  %v974_v57 = vld [vmem:[#allocation2 + $0xf8] sm:$0xf0] }
  0xe1   :  { %v437_v8 = vpop.f32.mrf.mxu0 }
  0xe2   :  { %v526_v9 = vpop.f32.mrf.mxu1 }
  0xe3   :  { %v1360_v10 = vadd.f32 %v526_v9, %v437_v8  ;;  %v1388_v8 = vor.u32 %v1069_v63, %v958_v2 }
  0xe4   :  { %476 = vmatmul.bf16.gmra.mxu0 %v1356_v4 }
  0xe5   :  { %565 = vmatmul.bf16.gmra.mxu1 %v1358_v5  ;;  %1476 = vst [vmem:[#allocation12_spill] sm:$0xff] %v1388_v8 }
  0xe9   :  { %v439_v11 = vpop.f32.mrf.mxu0 }
  0xea   :  { %v528_v14 = vpop.f32.mrf.mxu1 }
  0xeb   :  { %v1364_v15 = vadd.f32 %v528_v14, %v439_v11 }
  0xf1   :  { %v442_v27 = vpop.f32.mrf.mxu0 }
  0xf2   :  { %v531_v28 = vpop.f32.mrf.mxu1 }
  0xf3   :  { %v1372_v29 = vadd.f32 %v531_v28, %v442_v27  ;;  %v966_v27 = vld [vmem:[#allocation2 + $0xe8] sm:$0xf0]  ;;  %v1392_v28 = vor.u32 %v1072_v21, %v964_v20 }
  0xf4   :  { %481 = vmatmul.bf16.gmra.mxu0 %v1368_v23 }
  0xf5   :  { %570 = vmatmul.bf16.gmra.mxu1 %v1370_v26 }
  0xf9   :  { %v444_v32 = vpop.f32.mrf.mxu0 }
  0xfa   :  { %v533_v33 = vpop.f32.mrf.mxu1 }
  0xfb   :  { %v1376_v34 = vadd.f32 %v533_v33, %v444_v32  ;;  %v1394_v32 = vor.u32 %v1071_v22, %v966_v27 }
  0xfd   :  { %1477 = vst [vmem:[#allocation13_spill] sm:$0xff] %v1394_v32 }
 0x101   :  { %v447_v47 = vpop.f32.mrf.mxu0 }
 0x102   :  { %v536_v48 = vpop.f32.mrf.mxu1 }
 0x103   :  { %v537_v51 = vadd.f32 %v536_v48, %v447_v47  ;;  %v1074_v47 = vld [vmem:[#allocation2 + $0xf4] sm:$0xf0]  ;;  %v1073_v48 = vld [vmem:[#allocation2 + $0xf4] sm:$0xf] }
 0x104   :  { %486 = vmatmul.bf16.gmra.mxu0 %v1380_v44  ;;  %v1398_v61 = vor.u32 %v1074_v47, %v972_v42  ;;  %v1400_v63 = vor.u32 %v1073_v48, %v974_v57 }
 0x105   :  { %575 = vmatmul.bf16.gmra.mxu1 %v1382_v46 }
 0x106   :  { %1478 = vst [vmem:[#allocation14_spill] sm:$0xff] %v1398_v61 }
 0x107   :  { %1479 = vst [vmem:[#allocation15_spill] sm:$0xff] %v1400_v63 }
 0x109   :  { %v449_v54 = vpop.f32.mrf.mxu0 }
 0x10a   :  { %v538_v56 = vpop.f32.mrf.mxu1 }
 0x10b   :  { %v539_v46 = vadd.f32 %v538_v56, %v449_v54  ;;  %v1483_v56 = vpack.c.bf16 %v1340_v43, %v1336_v40 }
 0x111   :  { %v452_v9 = vpop.f32.mrf.mxu0 }
 0x112   :  { %v541_v11 = vpop.f32.mrf.mxu1 }
 0x113   :  { %v542_v48 = vadd.f32 %v541_v11, %v452_v9 }
 0x114   :  { %491 = vmatmul.bf16.gmra.mxu0 %v1386_v3 }
 0x115   :  { %580 = vmatmul.bf16.gmra.mxu1 %v1388_v8 }
 0x119   :  { %v454_v14 = vpop.f32.mrf.mxu0 }
 0x11a   :  { %v543_v16 = vpop.f32.mrf.mxu1 }
 0x121   :  { %v457_v33 = vpop.f32.mrf.mxu0 }
 0x122   :  { %v546_v35 = vpop.f32.mrf.mxu1 }
 0x123   :  { %v547_v38 = vadd.f32 %v546_v35, %v457_v33 }
 0x124   :  { %496 = vmatmul.bf16.gmra.mxu0 %v1392_v28 }
 0x125   :  { %585 = vmatmul.bf16.gmra.mxu1 %v1394_v32  ;;  %v544_v32 = vadd.f32 %v543_v16, %v454_v14 }
 0x127   :  { %v601_v26 = vpack.c.bf16 %v544_v32, %v542_v48 }
 0x129   :  { %v459_v39 = vpop.f32.mrf.mxu0 }
 0x12a   :  { %v548_v41 = vpop.f32.mrf.mxu1 }
 0x12b   :  { %v549_v62 = vadd.f32 %v548_v41, %v459_v39 }
 0x12d   :  { %v602_v8 = vpack.c.bf16 %v549_v62, %v547_v38  ;;  %v1480_v62 = vpack.c.bf16 %v1376_v34, %v1372_v29 }
 0x131   :  { %v462_v2 = vpop.f32.mrf.mxu0 }
 0x132   :  { %v551_v20 = vpop.f32.mrf.mxu1 }
 0x133   :  { %v552_v27 = vadd.f32 %v551_v20, %v462_v2 }
 0x134   :  { %501 = vmatmul.bf16.gmra.mxu0 %v1398_v61 }
 0x135   :  { %590 = vmatmul.bf16.gmra.mxu1 %v1400_v63  ;;  %v600_v63 = vpack.c.bf16 %v539_v46, %v537_v51 }
 0x139   :  { %v464_v21 = vpop.f32.mrf.mxu0 }
 0x13a   :  { %v553_v22 = vpop.f32.mrf.mxu1 }
 0x13b   :  { %v554_v45 = vadd.f32 %v553_v22, %v464_v21 }
 0x13d   :  { %v603_v17 = vpack.c.bf16 %v554_v45, %v552_v27 }
 0x13f   :  { %612 = vmatpush.bf16.msra.mxu2 %v603_v17 }
 0x141   :  { %v467_v42 = vpop.f32.mrf.mxu0 }
 0x142   :  { %v556_v47 = vpop.f32.mrf.mxu1 }
 0x143   :  { %v1404_v57 = vadd.f32 %v556_v47, %v467_v42  ;;  %613 = vmatpush.bf16.msra.mxu2 %v602_v8 }
 0x147   :  { %614 = vmatpush.bf16.msra.mxu2 %v601_v26  ;;  %v1481_v26 = vpack.c.bf16 %v1364_v15, %v1360_v10 }
 0x149   :  { %v469_v5 = vpop.f32.mrf.mxu0 }
 0x14a   :  { %v558_v61 = vpop.f32.mrf.mxu1 }
 0x14b   :  { %v1406_v2 = vadd.f32 %v558_v61, %v469_v5  ;;  %615 = vmatpush.bf16.msra.mxu2 %v600_v63  ;;  %v1482_v5 = vpack.c.bf16 %v1352_v60, %v1348_v55 }
 0x14d   :  { %v604_v45 = vpack.c.bf16 %v1406_v2, %v1404_v57 }
 0x14f   :  { %616 = vmatpush.bf16.msra.mxu2 %v1480_v62 }
 0x151   :  { %v472_v17 = vpop.f32.mrf.mxu0 }
 0x152   :  { %v561_v38 = vpop.f32.mrf.mxu1 }
 0x153   :  { %v1413_v9 = vadd.f32 %v561_v38, %v472_v17  ;;  %617 = vmatpush.bf16.msra.mxu2 %v1481_v26 }
 0x157   :  { %618 = vmatpush.bf16.msra.mxu2 %v1482_v5 }
 0x159   :  { %v474_v46 = vpop.f32.mrf.mxu0 }
 0x15a   :  { %v563_v51 = vpop.f32.mrf.mxu1 }
 0x15b   :  { %v564_v54 = vadd.f32 %v563_v51, %v474_v46  ;;  %619 = vmatpush.bf16.msra.mxu2 %v1483_v56 }
 0x15d   :  { %v605_v29 = vpack.c.bf16 %v564_v54, %v1413_v9 }
 0x15e   :  { %620 = vmatmul.bf16.vlgmr.msra.gmra.mxu2 %v1284_v52 }
 0x161   :  { %v477_v34 = vpop.f32.mrf.mxu0 }
 0x162   :  { %v566_v8 = vpop.f32.mrf.mxu1 }
 0x163   :  { %v567_v11 = vadd.f32 %v566_v8, %v477_v34 }
 0x169   :  { %v479_v10 = vpop.f32.mrf.mxu0 }
 0x16a   :  { %v568_v15 = vpop.f32.mrf.mxu1 }
 0x16b   :  { %v569_v14 = vadd.f32 %v568_v15, %v479_v10 }
 0x16d   :  { %v606_v16 = vpack.c.bf16 %v569_v14, %v567_v11 }
 0x16e   :  { %625 = vmatmul.bf16.gmra.mxu2 %v1290_v58 }
 0x171   :  { %v482_v55 = vpop.f32.mrf.mxu0 }
 0x172   :  { %v571_v60 = vpop.f32.mrf.mxu1 }
 0x173   :  { %v572_v32 = vadd.f32 %v571_v60, %v482_v55 }
 0x179   :  { %v484_v33 = vpop.f32.mrf.mxu0 }
 0x17a   :  { %v573_v35 = vpop.f32.mrf.mxu1 }
 0x17b   :  { %v574_v40 = vadd.f32 %v573_v35, %v484_v33  ;;  %v1487_v33 = vld [vmem:[#allocation11_spill] sm:$0xff] }
 0x17d   :  { %v607_v43 = vpack.c.bf16 %v574_v40, %v572_v32 }
 0x17e   :  { %630 = vmatmul.bf16.gmra.mxu2 %v1296_v0 }
 0x181   :  { %v487_v39 = vpop.f32.mrf.mxu0 }
 0x182   :  { %v576_v52 = vpop.f32.mrf.mxu1 }
 0x183   :  { %v577_v41 = vadd.f32 %v576_v52, %v487_v39 }
 0x189   :  { %v489_v61 = vpop.f32.mrf.mxu0 }
 0x18a   :  { %v578_v63 = vpop.f32.mrf.mxu1 }
 0x18b   :  { %v579_v56 = vadd.f32 %v578_v63, %v489_v61 }
 0x18e   :  { %635 = vmatmul.bf16.gmra.mxu2 %v1302_v6 }
 0x191   :  { %v492_v20 = vpop.f32.mrf.mxu0 }
 0x192   :  { %v581_v21 = vpop.f32.mrf.mxu1 }
 0x193   :  { %v582_v54 = vadd.f32 %v581_v21, %v492_v20 }
 0x199   :  { %v494_v22 = vpop.f32.mrf.mxu0 }
 0x19a   :  { %v583_v58 = vpop.f32.mrf.mxu1 }
 0x19b   :  { %v584_v51 = vadd.f32 %v583_v58, %v494_v22 }
 0x19d   :  { %v609_v34 = vpack.c.bf16 %v584_v51, %v582_v54 }
 0x19e   :  { %640 = vmatmul.bf16.gmra.mxu2 %v1308_v12 }
 0x1a1   :  { %v497_v27 = vpop.f32.mrf.mxu0 }
 0x1a2   :  { %v586_v42 = vpop.f32.mrf.mxu1 }
 0x1a3   :  { %v587_v46 = vadd.f32 %v586_v42, %v497_v27  ;;  %v1489_v27 = vld [vmem:[#allocation13_spill] sm:$0xff] }
 0x1a9   :  { %v499_v47 = vpop.f32.mrf.mxu0 }
 0x1aa   :  { %v588_v48 = vpop.f32.mrf.mxu1 }
 0x1ab   :  { %v589_v5 = vadd.f32 %v588_v48, %v499_v47 }
 0x1ad   :  { %v610_v12 = vpack.c.bf16 %v589_v5, %v587_v46 }
 0x1ae   :  { %645 = vmatmul.bf16.gmra.mxu2 %v1314_v18  ;;  %v608_v18 = vpack.c.bf16 %v579_v56, %v577_v41  ;;  %v1488_v41 = vld [vmem:[#allocation12_spill] sm:$0xff] }
 0x1b1   :  { %v502_v0 = vpop.f32.mrf.mxu0 }
 0x1b2   :  { %v591_v62 = vpop.f32.mrf.mxu1 }
 0x1b3   :  { %v592_v9 = vadd.f32 %v591_v62, %v502_v0 }
 0x1b9   :  { %v504_v17 = vpop.f32.mrf.mxu0 }
 0x1ba   :  { %v593_v38 = vpop.f32.mrf.mxu1 }
 0x1bb   :  { %v594_v26 = vadd.f32 %v593_v38, %v504_v17  ;;  %v1490_v38 = vld [vmem:[#allocation15_spill] sm:$0xff] }
 0x1bd   :  { %v611_v6 = vpack.c.bf16 %v594_v26, %v592_v9 }
 0x1be   :  { %650 = vmatmul.bf16.gmra.mxu2 %v1320_v24 }
 0x1bf   :  { %701 = vmatpush.bf16.msra.mxu3 %v611_v6 }
 0x1c3   :  { %702 = vmatpush.bf16.msra.mxu3 %v610_v12 }
 0x1c7   :  { %703 = vmatpush.bf16.msra.mxu3 %v609_v34 }
 0x1cb   :  { %704 = vmatpush.bf16.msra.mxu3 %v608_v18 }
 0x1ce   :  { %655 = vmatmul.bf16.gmra.mxu2 %v1326_v30 }
 0x1cf   :  { %705 = vmatpush.bf16.msra.mxu3 %v607_v43 }
 0x1d3   :  { %706 = vmatpush.bf16.msra.mxu3 %v606_v16 }
 0x1d7   :  { %707 = vmatpush.bf16.msra.mxu3 %v605_v29 }
 0x1db   :  { %708 = vmatpush.bf16.msra.mxu3 %v604_v45 }
 0x1de   :  { %709 = vmatmul.bf16.vlgmr.msra.gmra.mxu3 %v1286_v53  ;;  %660 = vmatmul.bf16.gmra.mxu2 %v1332_v36 }
 0x1e1   :  { %v621_v24 = vpop.f32.mrf.mxu2 }
 0x1e9   :  { %v623_v53 = vpop.f32.mrf.mxu2 }
 0x1ee   :  { %714 = vmatmul.bf16.gmra.mxu3 %v1292_v59  ;;  %665 = vmatmul.bf16.gmra.mxu2 %v1344_v49 }
 0x1f1   :  { %v626_v59 = vpop.f32.mrf.mxu2 }
 0x1fe   :  { %719 = vmatmul.bf16.gmra.mxu3 %v1298_v1  ;;  %670 = vmatmul.bf16.gmra.mxu2 %v1356_v4  ;;  %v628_v1 = vpop.f32.mrf.mxu2 }
 0x206   :  { %v631_v30 = vpop.f32.mrf.mxu2 }
 0x20e   :  { %724 = vmatmul.bf16.gmra.mxu3 %v1304_v7  ;;  %675 = vmatmul.bf16.gmra.mxu2 %v1368_v23  ;;  %v633_v7 = vpop.f32.mrf.mxu2 }
 0x216   :  { %v636_v36 = vpop.f32.mrf.mxu2 }
 0x21e   :  { %729 = vmatmul.bf16.gmra.mxu3 %v1310_v13  ;;  %680 = vmatmul.bf16.gmra.mxu2 %v1380_v44  ;;  %v638_v4 = vpop.f32.mrf.mxu2 }
 0x22e   :  { %734 = vmatmul.bf16.gmra.mxu3 %v1316_v19  ;;  %685 = vmatmul.bf16.gmra.mxu2 %v1386_v3  ;;  %v641_v3 = vpop.f32.mrf.mxu2 }
 0x236   :  { %v643_v2 = vpop.f32.mrf.mxu2 }
 0x23e   :  { %739 = vmatmul.bf16.gmra.mxu3 %v1322_v25  ;;  %690 = vmatmul.bf16.gmra.mxu2 %v1392_v28  ;;  %v1485_v28 = vld [vmem:[#allocation9_spill] sm:$0xff]  ;;  %v646_v8 = vpop.f32.mrf.mxu2 }
 0x246   :  { %v648_v14 = vpop.f32.mrf.mxu2 }
 0x24e   :  { %744 = vmatmul.bf16.gmra.mxu3 %v1328_v31  ;;  %v1484_v31 = vld [vmem:[#allocation14_spill] sm:$0xff]  ;;  %v651_v32 = vpop.f32.mrf.mxu2 }
 0x24f   :  { %695 = vmatmul.bf16.gmra.mxu2 %v1484_v31 }
 0x256   :  { %v653_v43 = vpop.f32.mrf.mxu2 }
 0x25e   :  { %749 = vmatmul.bf16.gmra.mxu3 %v1334_v37  ;;  %v656_v61 = vpop.f32.mrf.mxu2 }
 0x261   :  { %v710_v13 = vpop.f32.mrf.mxu3 }
 0x262   :  { %v711_v19 = vadd.f32 %v710_v13, %v621_v24 }
 0x264   :  { %790 = vst [vmem:[#allocation4] sm:$0xff] %v711_v19 }
 0x266   :  { %v658_v22 = vpop.f32.mrf.mxu2 }
 0x269   :  { %v712_v25 = vpop.f32.mrf.mxu3 }
 0x26a   :  { %v713_v49 = vadd.f32 %v712_v25, %v623_v53 }
 0x26c   :  { %791 = vst [vmem:[#allocation4 + $0x8] sm:$0xff] %v713_v49 }
 0x26e   :  { %754 = vmatmul.bf16.gmra.mxu3 %v1346_v50  ;;  %v1486_v50 = vld [vmem:[#allocation10_spill] sm:$0xff]  ;;  %v661_v48 = vpop.f32.mrf.mxu2 }
 0x271   :  { %v715_v23 = vpop.f32.mrf.mxu3 }
 0x272   :  { %v716_v44 = vadd.f32 %v715_v23, %v626_v59 }
 0x274   :  { %792 = vst [vmem:[#allocation4 + $0x10] sm:$0xff] %v716_v44 }
 0x276   :  { %v663_v17 = vpop.f32.mrf.mxu2 }
 0x279   :  { %v717_v37 = vpop.f32.mrf.mxu3 }
 0x27a   :  { %v718_v57 = vadd.f32 %v717_v37, %v628_v1 }
 0x27c   :  { %793 = vst [vmem:[#allocation4 + $0x18] sm:$0xff] %v718_v57 }
 0x27e   :  { %759 = vmatmul.bf16.gmra.mxu3 %v1485_v28  ;;  %v666_v5 = vpop.f32.mrf.mxu2 }
 0x281   :  { %v720_v45 = vpop.f32.mrf.mxu3 }
 0x282   :  { %v721_v29 = vadd.f32 %v720_v45, %v631_v30 }
 0x284   :  { %794 = vst [vmem:[#allocation4 + $0x20] sm:$0xff] %v721_v29 }
 0x286   :  { %v668_v12 = vpop.f32.mrf.mxu2 }
 0x289   :  { %v722_v11 = vpop.f32.mrf.mxu3 }
 0x28a   :  { %v723_v10 = vadd.f32 %v722_v11, %v633_v7 }
 0x28c   :  { %795 = vst [vmem:[#allocation4 + $0x28] sm:$0xff] %v723_v10 }
 0x28e   :  { %764 = vmatmul.bf16.gmra.mxu3 %v1486_v50  ;;  %v671_v18 = vpop.f32.mrf.mxu2 }
 0x291   :  { %v725_v15 = vpop.f32.mrf.mxu3 }
 0x292   :  { %v726_v16 = vadd.f32 %v725_v15, %v636_v36 }
 0x294   :  { %796 = vst [vmem:[#allocation4 + $0x30] sm:$0xff] %v726_v16 }
 0x296   :  { %v673_v59 = vpop.f32.mrf.mxu2 }
 0x299   :  { %v727_v55 = vpop.f32.mrf.mxu3 }
 0x29a   :  { %v728_v60 = vadd.f32 %v727_v55, %v638_v4 }
 0x29c   :  { %797 = vst [vmem:[#allocation4 + $0x38] sm:$0xff] %v728_v60 }
 0x29e   :  { %769 = vmatmul.bf16.gmra.mxu3 %v1487_v33  ;;  %v676_v7 = vpop.f32.mrf.mxu2 }
 0x2a1   :  { %v730_v35 = vpop.f32.mrf.mxu3 }
 0x2a2   :  { %v731_v40 = vadd.f32 %v730_v35, %v641_v3 }
 0x2a4   :  { %798 = vst [vmem:[#allocation4 + $0x40] sm:$0xff] %v731_v40 }
 0x2a6   :  { %v678_v25 = vpop.f32.mrf.mxu2 }
 0x2a9   :  { %v732_v39 = vpop.f32.mrf.mxu3 }
 0x2aa   :  { %v733_v52 = vadd.f32 %v732_v39, %v643_v2 }
 0x2ac   :  { %799 = vst [vmem:[#allocation4 + $0x48] sm:$0xff] %v733_v52 }
 0x2ae   :  { %774 = vmatmul.bf16.gmra.mxu3 %v1488_v41  ;;  %v681_v23 = vpop.f32.mrf.mxu2 }
 0x2b1   :  { %v735_v63 = vpop.f32.mrf.mxu3 }
 0x2b2   :  { %v736_v20 = vadd.f32 %v735_v63, %v646_v8 }
 0x2b4   :  { %800 = vst [vmem:[#allocation4 + $0x50] sm:$0xff] %v736_v20 }
 0x2b6   :  { %v683_v37 = vpop.f32.mrf.mxu2 }
 0x2b9   :  { %v737_v21 = vpop.f32.mrf.mxu3 }
 0x2ba   :  { %v738_v58 = vadd.f32 %v737_v21, %v648_v14 }
 0x2bc   :  { %801 = vst [vmem:[#allocation4 + $0x58] sm:$0xff] %v738_v58 }
 0x2be   :  { %779 = vmatmul.bf16.gmra.mxu3 %v1489_v27  ;;  %v686_v2 = vpop.f32.mrf.mxu2 }
 0x2c1   :  { %v740_v42 = vpop.f32.mrf.mxu3 }
 0x2c2   :  { %v741_v47 = vadd.f32 %v740_v42, %v651_v32 }
 0x2c4   :  { %802 = vst [vmem:[#allocation4 + $0x60] sm:$0xff] %v741_v47 }
 0x2c6   :  { %v688_v8 = vpop.f32.mrf.mxu2 }
 0x2c9   :  { %v742_v0 = vpop.f32.mrf.mxu3 }
 0x2ca   :  { %v743_v62 = vadd.f32 %v742_v0, %v653_v43 }
 0x2cc   :  { %803 = vst [vmem:[#allocation4 + $0x68] sm:$0xff] %v743_v62 }
 0x2ce   :  { %784 = vmatmul.bf16.gmra.mxu3 %v1490_v38  ;;  %v691_v14 = vpop.f32.mrf.mxu2 }
 0x2d1   :  { %v745_v9 = vpop.f32.mrf.mxu3 }
 0x2d2   :  { %v746_v26 = vadd.f32 %v745_v9, %v656_v61 }
 0x2d4   :  { %804 = vst [vmem:[#allocation4 + $0x70] sm:$0xff] %v746_v26 }
 0x2d6   :  { %v693_v60 = vpop.f32.mrf.mxu2 }
 0x2d9   :  { %v747_v6 = vpop.f32.mrf.mxu3 }
 0x2da   :  { %v748_v46 = vadd.f32 %v747_v6, %v658_v22 }
 0x2dc   :  { %805 = vst [vmem:[#allocation4 + $0x78] sm:$0xff] %v748_v46 }
 0x2de   :  { %v696_v35 = vpop.f32.mrf.mxu2 }
 0x2e1   :  { %v750_v51 = vpop.f32.mrf.mxu3 }
 0x2e2   :  { %v751_v54 = vadd.f32 %v750_v51, %v661_v48 }
 0x2e4   :  { %806 = vst [vmem:[#allocation4 + $0x80] sm:$0xff] %v751_v54 }
 0x2e6   :  { %v698_v39 = vpop.f32.mrf.mxu2 }
 0x2e9   :  { %v752_v56 = vpop.f32.mrf.mxu3 }
 0x2ea   :  { %v753_v34 = vadd.f32 %v752_v56, %v663_v17 }
 0x2ec   :  { %807 = vst [vmem:[#allocation4 + $0x88] sm:$0xff] %v753_v34 }
 0x2f1   :  { %v755_v24 = vpop.f32.mrf.mxu3 }
 0x2f2   :  { %v756_v53 = vadd.f32 %v755_v24, %v666_v5 }
 0x2f4   :  { %808 = vst [vmem:[#allocation4 + $0x90] sm:$0xff] %v756_v53 }
 0x2f9   :  { %v757_v1 = vpop.f32.mrf.mxu3 }
 0x2fa   :  { %v758_v30 = vadd.f32 %v757_v1, %v668_v12 }
 0x2fc   :  { %809 = vst [vmem:[#allocation4 + $0x98] sm:$0xff] %v758_v30 }
 0x301   :  { %v760_v13 = vpop.f32.mrf.mxu3 }
 0x302   :  { %v761_v19 = vadd.f32 %v760_v13, %v671_v18 }
 0x304   :  { %810 = vst [vmem:[#allocation4 + $0xa0] sm:$0xff] %v761_v19 }
 0x309   :  { %v762_v36 = vpop.f32.mrf.mxu3 }
 0x30a   :  { %v763_v49 = vadd.f32 %v762_v36, %v673_v59 }
 0x30c   :  { %811 = vst [vmem:[#allocation4 + $0xa8] sm:$0xff] %v763_v49 }
 0x311   :  { %v765_v4 = vpop.f32.mrf.mxu3 }
 0x312   :  { %v766_v31 = vadd.f32 %v765_v4, %v676_v7 }
 0x314   :  { %812 = vst [vmem:[#allocation4 + $0xb0] sm:$0xff] %v766_v31 }
 0x319   :  { %v767_v44 = vpop.f32.mrf.mxu3 }
 0x31a   :  { %v768_v3 = vadd.f32 %v767_v44, %v678_v25 }
 0x31c   :  { %813 = vst [vmem:[#allocation4 + $0xb8] sm:$0xff] %v768_v3 }
 0x321   :  { %v770_v57 = vpop.f32.mrf.mxu3 }
 0x322   :  { %v771_v28 = vadd.f32 %v770_v57, %v681_v23 }
 0x324   :  { %814 = vst [vmem:[#allocation4 + $0xc0] sm:$0xff] %v771_v28 }
 0x329   :  { %v772_v45 = vpop.f32.mrf.mxu3 }
 0x32a   :  { %v773_v29 = vadd.f32 %v772_v45, %v683_v37 }
 0x32c   :  { %815 = vst [vmem:[#allocation4 + $0xc8] sm:$0xff] %v773_v29 }
 0x331   :  { %v775_v11 = vpop.f32.mrf.mxu3 }
 0x332   :  { %v776_v10 = vadd.f32 %v775_v11, %v686_v2 }
 0x334   :  { %816 = vst [vmem:[#allocation4 + $0xd0] sm:$0xff] %v776_v10 }
 0x339   :  { %v777_v50 = vpop.f32.mrf.mxu3 }
 0x33a   :  { %v778_v15 = vadd.f32 %v777_v50, %v688_v8 }
 0x33c   :  { %817 = vst [vmem:[#allocation4 + $0xd8] sm:$0xff] %v778_v15 }
 0x341   :  { %v780_v16 = vpop.f32.mrf.mxu3 }
 0x342   :  { %v781_v55 = vadd.f32 %v780_v16, %v691_v14 }
 0x344   :  { %818 = vst [vmem:[#allocation4 + $0xe0] sm:$0xff] %v781_v55 }
 0x349   :  { %v782_v32 = vpop.f32.mrf.mxu3 }
 0x34a   :  { %v783_v33 = vadd.f32 %v782_v32, %v693_v60 }
 0x34c   :  { %819 = vst [vmem:[#allocation4 + $0xe8] sm:$0xff] %v783_v33 }
 0x351   :  { %v785_v40 = vpop.f32.mrf.mxu3 }
 0x352   :  { %v786_v43 = vadd.f32 %v785_v40, %v696_v35 }
 0x354   :  { %820 = vst [vmem:[#allocation4 + $0xf0] sm:$0xff] %v786_v43 }
 0x359   :  { %v787_v52 = vpop.f32.mrf.mxu3 }
 0x35a   :  { %v788_v41 = vadd.f32 %v787_v52, %v698_v39 }
 0x35c   :  { %821 = vst [vmem:[#allocation4 + $0xf8] sm:$0xff] %v788_v41 }
 0x35d   :  { %834 = dma.vmem_to_hbm [thread:$0]  %s827_s20, 4096, %s829_s1, [#allocation5], %s1123_s23, %s1123_s23, %s1124_s24  }
 0x35e   :  { %1120 = dma.done.wait [#allocation5], 4096  }
 0x35f   :  { %1121 = vsyncadd [#allocation5], 4294963200 }
 0x360   :  { %839 = vsyncpa [#allocation5], 1 }
 0x361   :  { %840 = vsyncmov [#allocation3] }
 0x364   :  { %s841_s25 = vpop.sfrf %840 }
 0x365   :  { %p1042_p0 = scmp.ne.s32.totalorder %s841_s25, 0 }
 0x367   :  { %845 = shalt.err (%p1042_p0)  }

</bundles_post_ra>
